<compile_context>
chip_gen: v7x
topology: tpu7x:2x2x1
jax: 0.10.0
libtpu: 0.0.40
codegen_flags: <defaults>
</compile_context>

<pallas_src>
import functools

import jax
import jax.numpy as jnp
from jax.experimental import pallas as pl
from jax.experimental.pallas import tpu as pltpu


def _round_up(x, m):
    return ((x + m - 1) // m) * m


def _ensemble_mlp_kernel(x_ref, w1_ref, b1_ref, w2_ref, b2_ref, out_ref):
    x = x_ref[...]                                                      # (bb, d_in) bf16

    # Layer 1, fused over the whole ensemble: one lane-dense bf16 MXU matmul.
    h = jnp.dot(x, w1_ref[...], preferred_element_type=jnp.float32)    # (bb, EH_pad) f32
    h = jnp.maximum(h + b1_ref[...], 0.0)                              # bias/ReLU on VPU, f32

    # Layer 2: single matmul against block-diagonal W2 -> lane-dense output slab.
    h = h.astype(w2_ref.dtype)                                         # bf16 for MXU fast path
    o = jnp.dot(h, w2_ref[...], preferred_element_type=jnp.float32)    # (bb, EO_pad) f32

    out_ref[...] = (o + b2_ref[...]).astype(out_ref.dtype)             # one unmasked store


def _resident_spec(block_shape):
    """Resident (constant index_map) block: single-buffered if supported."""
    ndim = len(block_shape)
    index_map = lambda i: (0,) * ndim
    try:
        return pl.BlockSpec(block_shape, index_map, pipeline_mode=pl.Buffered(1))
    except TypeError:  # older jax without pipeline_mode kwarg
        return pl.BlockSpec(block_shape, index_map)


@functools.partial(jax.jit, static_argnames=("block_b",))
def ensemble_forward(x, w1_all, b1_all, w2_bd, b2_all, *, block_b=256):
    """Run all ensemble members on the same input.

    x      : (B, d_in)                 any float dtype (cast to bf16 inside)
    w1_all : (d_in, EH_pad)  bf16      layer-1 weights fused over members (zero padded)
    b1_all : (1, EH_pad)     f32
    w2_bd  : (EH_pad, EO_pad) bf16     block-diagonal layer-2 weights (zero padded)
    b2_all : (1, EO_pad)     f32
    returns: (B, EO_pad)     f32       member e lives in cols [e*n_out, (e+1)*n_out)
    """
    B, d_in = x.shape
    eh_pad = w1_all.shape[1]
    eo_pad = w2_bd.shape[1]

    bb = min(block_b, B)
    if bb < B:
        bb = max(8, (bb // 8) * 8)      # keep sublane-aligned batch tiles
    grid = (pl.cdiv(B, bb),)

    x = x.astype(jnp.bfloat16)

    # Rough but honest VMEM budget: resident weights + double-buffered x/out
    # tiles + f32 intermediates, with 2x headroom for compiler scratch.
    bytes_resident = d_in * eh_pad * 2 + eh_pad * 4 + eh_pad * eo_pad * 2 + eo_pad * 4
    bytes_pipelined = 2 * (bb * d_in * 2) + 2 * (bb * eo_pad * 4)
    bytes_interm = bb * eh_pad * 4 + bb * eo_pad * 4
    vmem_limit = int(min(100 * 2**20, max(2 * (bytes_resident + bytes_pipelined + bytes_interm),
                                          8 * 2**20)))

    flops = 2 * B * (d_in * eh_pad + eh_pad * eo_pad)
    bytes_accessed = (B * d_in * 2 + d_in * eh_pad * 2 + eh_pad * 4
                      + eh_pad * eo_pad * 2 + eo_pad * 4 + B * eo_pad * 4)

    return pl.pallas_call(
        _ensemble_mlp_kernel,
        out_shape=jax.ShapeDtypeStruct((B, eo_pad), jnp.float32),
        grid_spec=pltpu.PrefetchScalarGridSpec(
            num_scalar_prefetch=0,
            grid=grid,
            in_specs=[
                pl.BlockSpec((bb, d_in), lambda i: (i, 0)),   # x: tiled over batch
                _resident_spec((d_in, eh_pad)),               # fused W1: resident, 1-buffered
                _resident_spec((1, eh_pad)),                  # b1: resident
                _resident_spec((eh_pad, eo_pad)),             # block-diag W2: resident
                _resident_spec((1, eo_pad)),                  # b2: resident
            ],
            out_specs=pl.BlockSpec((bb, eo_pad), lambda i: (i, 0)),  # lane-dense slab
        ),
        compiler_params=pltpu.CompilerParams(
            dimension_semantics=("parallel",),               # batch blocks -> megacore (v7x)
            vmem_limit_bytes=vmem_limit,
        ),
        cost_estimate=pl.CostEstimate(
            flops=flops, transcendentals=0, bytes_accessed=bytes_accessed),
    )(x, w1_all, b1_all, w2_bd, b2_all)


class NetworkEnsemblePallas:
    """Mirrors NetworkEnsemble.forward: single output if n_networks == 1,
    else a list of per-network outputs."""

    def __init__(self, d_in, hidden, n_out, n_networks=1, key=None):
        self.n_networks = n_networks
        self.d_in = d_in
        self.hidden = hidden
        self._n_out = n_out
        if key is None:
            key = jax.random.PRNGKey(0)
        k1, k2 = jax.random.split(key)

        # One deterministic base-network init ...
        w1 = jax.random.normal(k1, (d_in, hidden), jnp.float32) * 0.1
        b1 = jnp.zeros((hidden,), jnp.float32)
        w2 = jax.random.normal(k2, (hidden, n_out), jnp.float32) * 0.1
        b2 = jnp.zeros((n_out,), jnp.float32)

        # ... replicated across the ensemble (copy.deepcopy semantics). Members
        # may later diverge; the fused/block-diag layout handles arbitrary
        # per-member weights.
        w1_stack = jnp.broadcast_to(w1[None], (n_networks, d_in, hidden))
        b1_stack = jnp.broadcast_to(b1[None], (n_networks, hidden))
        w2_stack = jnp.broadcast_to(w2[None], (n_networks, hidden, n_out))
        b2_stack = jnp.broadcast_to(b2[None], (n_networks, n_out))
        self.set_member_weights(w1_stack, b1_stack, w2_stack, b2_stack)

    def set_member_weights(self, w1_stack, b1_stack, w2_stack, b2_stack):
        E, H, n_out, d_in = self.n_networks, self.hidden, self._n_out, self.d_in
        # Keep the stacked f32 form for reference / external use.
        self.w1_stack, self.b1_stack = w1_stack, b1_stack
        self.w2_stack, self.b2_stack = w2_stack, b2_stack

        eh, eo = E * H, E * n_out
        self._eh_pad = _round_up(eh, 128)
        self._eo_pad = _round_up(eo, 128)

        # Layer 1: fuse over members -> (d_in, E*H), member e in cols [e*H,(e+1)*H),
        # zero-padded on the lane axis to a 128 multiple (padded h columns are 0).
        w1_all = jnp.transpose(w1_stack, (1, 0, 2)).reshape(d_in, eh)
        w1_all = jnp.pad(w1_all, ((0, 0), (0, self._eh_pad - eh)))
        b1_all = jnp.pad(b1_stack.reshape(1, eh), ((0, 0), (0, self._eh_pad - eh)))

        # Layer 2: block-diagonal (E*H, E*n_out), zero-padded both axes.
        w2_bd = jnp.zeros((self._eh_pad, self._eo_pad), jnp.float32)
        for e in range(E):
            w2_bd = w2_bd.at[e * H:(e + 1) * H, e * n_out:(e + 1) * n_out].set(w2_stack[e])
        b2_all = jnp.pad(b2_stack.reshape(1, eo), ((0, 0), (0, self._eo_pad - eo)))

        # bf16 operands for the MXU fast path; biases stay f32 (added to f32 acc).
        self.w1_all = w1_all.astype(jnp.bfloat16)
        self.b1_all = b1_all
        self.w2_bd = w2_bd.astype(jnp.bfloat16)
        self.b2_all = b2_all

    @property
    def n_out(self):
        return self._n_out

    def _slab(self, x):
        return ensemble_forward(x, self.w1_all, self.b1_all, self.w2_bd, self.b2_all)

    def forward_stacked(self, x):
        """(E, B, n_out) stacked output (costs one extra reshape/transpose)."""
        B = x.shape[0]
        slab = self._slab(x)[:, :self.n_networks * self._n_out]
        return slab.reshape(B, self.n_networks, self._n_out).transpose(1, 0, 2)

    def forward(self, x):
        slab = self._slab(x)
        n_out = self._n_out
        if self.n_networks == 1:
            return slab[:, :n_out]
        # Per-member outputs are contiguous column slices of the slab -> cheap views,
        # no full-output transpose round-trip.
        return [slab[:, e * n_out:(e + 1) * n_out] for e in range(self.n_networks)]

    # TODO(synk): reset/planning_mode/acting_mode/detach/attach_hidden_state are
    # stateful RNN hooks on the (unspecified) base network; no-ops for the MLP base.


def _reference_forward(x, w1_stack, b1_stack, w2_stack, b2_stack):
    h = jnp.maximum(jnp.einsum("bd,edh->ebh", x, w1_stack) + b1_stack[:, None, :], 0.0)
    return jnp.einsum("ebh,eho->ebo", h, w2_stack) + b2_stack[:, None, :]


if __name__ == "__main__":
    key = jax.random.PRNGKey(0)
    kx, kp = jax.random.split(key)

    B, D_IN, HIDDEN, N_OUT, N_NETWORKS = 8, 32, 64, 16, 3

    x = jax.random.normal(kx, (B, D_IN), jnp.float32)
    ensemble = NetworkEnsemblePallas(D_IN, HIDDEN, N_OUT, n_networks=N_NETWORKS, key=kp)

    outputs = ensemble.forward(x)
    outputs = jax.block_until_ready(outputs)

    # Correctness check against a pure-JAX f32 reference (tolerance loosened for
    # the bf16 MXU operands).
    ref = _reference_forward(x, ensemble.w1_stack, ensemble.b1_stack,
                             ensemble.w2_stack, ensemble.b2_stack)
    stacked = jnp.stack(outputs) if isinstance(outputs, list) else outputs[None]
    assert stacked.shape == (N_NETWORKS, B, N_OUT)
    assert jnp.allclose(stacked, ref, atol=3e-2, rtol=3e-2)

    # Also exercise the n_networks == 1 path (returns a single array, not a list).
    single = NetworkEnsemblePallas(D_IN, HIDDEN, N_OUT, n_networks=1, key=kp)
    out1 = jax.block_until_ready(single.forward(x))
    assert out1.shape == (B, N_OUT)
    ref1 = _reference_forward(x, single.w1_stack, single.b1_stack,
                              single.w2_stack, single.b2_stack)[0]
    assert jnp.allclose(out1, ref1, atol=3e-2, rtol=3e-2)

    # And the stacked convenience path.
    stk = jax.block_until_ready(ensemble.forward_stacked(x))
    assert stk.shape == (N_NETWORKS, B, N_OUT)
    assert jnp.allclose(stk, ref, atol=3e-2, rtol=3e-2)

    print("KERNEL_OK")
</pallas_src>

<mosaic_0001>
module attributes {stable_mosaic.version = 11 : i64} {
  func.func @_ensemble_mlp_kernel(%arg0: i32, %arg1: memref<8x32xbf16, #tpu.memory_space<vmem>>, %arg2: memref<32x256xbf16, #tpu.memory_space<vmem>>, %arg3: memref<1x256xf32, #tpu.memory_space<vmem>>, %arg4: memref<256x128xbf16, #tpu.memory_space<vmem>>, %arg5: memref<1x128xf32, #tpu.memory_space<vmem>>, %arg6: memref<8x128xf32, #tpu.memory_space<vmem>>) attributes {dimension_semantics = [#tpu.dimension_semantics<parallel>], iteration_bounds = array<i64: 1>, scalar_prefetch = 0 : i64, scratch_operands = 0 : i64, tpu.core_type = #tpu.core_type<tc>, window_params = [{transform_indices = @transform_0, window_bounds = array<i64: 8, 32>}, {pipeline_mode = #tpu.pipeline_mode<synchronous>, transform_indices = @transform_1, window_bounds = array<i64: 32, 256>}, {pipeline_mode = #tpu.pipeline_mode<synchronous>, transform_indices = @transform_2, window_bounds = array<i64: 1, 256>}, {pipeline_mode = #tpu.pipeline_mode<synchronous>, transform_indices = @transform_3, window_bounds = array<i64: 256, 128>}, {pipeline_mode = #tpu.pipeline_mode<synchronous>, transform_indices = @transform_4, window_bounds = array<i64: 1, 128>}, {transform_indices = @transform_5, window_bounds = array<i64: 8, 128>}]} {
    %c0 = arith.constant 0 : index
    %c0_0 = arith.constant 0 : index
    %0 = vector.load %arg1[%c0, %c0_0] : memref<8x32xbf16, #tpu.memory_space<vmem>>, vector<8x32xbf16>
    %c0_1 = arith.constant 0 : index
    %c0_2 = arith.constant 0 : index
    %1 = vector.load %arg2[%c0_1, %c0_2] : memref<32x256xbf16, #tpu.memory_space<vmem>>, vector<32x256xbf16>
    %cst = arith.constant dense<0.000000e+00> : vector<8x256xf32>
    %2 = tpu.matmul %0, %1, %cst {dimension_numbers = #tpu.dot_dimension_numbers<[1], [0], [0], [1], [0, 0, 1, 1], [], []>} : vector<8x32xbf16>, vector<32x256xbf16>, vector<8x256xf32> -> vector<8x256xf32>
    %c0_3 = arith.constant 0 : index
    %c0_4 = arith.constant 0 : index
    %3 = vector.load %arg3[%c0_3, %c0_4] : memref<1x256xf32, #tpu.memory_space<vmem>>, vector<1x256xf32>
    %4 = vector.broadcast %3 : vector<1x256xf32> to vector<8x256xf32>
    %5 = arith.addf %2, %4 : vector<8x256xf32>
    %cst_5 = arith.constant 0.000000e+00 : f32
    %6 = vector.broadcast %cst_5 : f32 to vector<8x256xf32>
    %7 = arith.maximumf %5, %6 : vector<8x256xf32>
    %8 = arith.truncf %7 : vector<8x256xf32> to vector<8x256xbf16>
    %c0_6 = arith.constant 0 : index
    %c0_7 = arith.constant 0 : index
    %9 = vector.load %arg4[%c0_6, %c0_7] : memref<256x128xbf16, #tpu.memory_space<vmem>>, vector<256x128xbf16>
    %cst_8 = arith.constant dense<0.000000e+00> : vector<8x128xf32>
    %10 = tpu.matmul %8, %9, %cst_8 {dimension_numbers = #tpu.dot_dimension_numbers<[1], [0], [0], [1], [0, 0, 1, 1], [], []>} : vector<8x256xbf16>, vector<256x128xbf16>, vector<8x128xf32> -> vector<8x128xf32>
    %c0_9 = arith.constant 0 : index
    %c0_10 = arith.constant 0 : index
    %11 = vector.load %arg5[%c0_9, %c0_10] : memref<1x128xf32, #tpu.memory_space<vmem>>, vector<1x128xf32>
    %12 = vector.broadcast %11 : vector<1x128xf32> to vector<8x128xf32>
    %13 = arith.addf %10, %12 : vector<8x128xf32>
    %c0_11 = arith.constant 0 : index
    %c0_12 = arith.constant 0 : index
    %14 = vector.load %arg6[%c0_11, %c0_12] : memref<8x128xf32, #tpu.memory_space<vmem>>, vector<8x128xf32>
    tpu.vector_store %arg6[%c0_11, %c0_12], %13 {strides = array<i32>} : memref<8x128xf32, #tpu.memory_space<vmem>>, vector<8x128xf32>,
    return
  }
  func.func @transform_0(%arg0: i32) -> (i32, i32) {
    %c0_i32 = arith.constant 0 : i32
    %c0_i32_0 = arith.constant 0 : i32
    return %arg0, %c0_i32 : i32, i32
  }
  func.func @transform_1(%arg0: i32) -> (i32, i32) {
    %c0_i32 = arith.constant 0 : i32
    %c0_i32_0 = arith.constant 0 : i32
    %c0_i32_1 = arith.constant 0 : i32
    return %c0_i32, %c0_i32_0 : i32, i32
  }
  func.func @transform_2(%arg0: i32) -> (i32, i32) {
    %c0_i32 = arith.constant 0 : i32
    %c0_i32_0 = arith.constant 0 : i32
    %c0_i32_1 = arith.constant 0 : i32
    return %c0_i32, %c0_i32_0 : i32, i32
  }
  func.func @transform_3(%arg0: i32) -> (i32, i32) {
    %c0_i32 = arith.constant 0 : i32
    %c0_i32_0 = arith.constant 0 : i32
    %c0_i32_1 = arith.constant 0 : i32
    return %c0_i32, %c0_i32_0 : i32, i32
  }
  func.func @transform_4(%arg0: i32) -> (i32, i32) {
    %c0_i32 = arith.constant 0 : i32
    %c0_i32_0 = arith.constant 0 : i32
    %c0_i32_1 = arith.constant 0 : i32
    return %c0_i32, %c0_i32_0 : i32, i32
  }
  func.func @transform_5(%arg0: i32) -> (i32, i32) {
    %c0_i32 = arith.constant 0 : i32
    %c0_i32_0 = arith.constant 0 : i32
    return %arg0, %c0_i32 : i32, i32
  }
}

</mosaic_0001>

<bundles_post_ra>
// kernel: ensemble_forward.1
= control target key start
LH: loop header
LB: loop body
LE: loop exit
PB: predicated region body
PF: predicated region fallthrough
CT: control target
= control target key end

     0   :  { %10 = vsyncpa [#allocation3], 0  ;;  %s557_s0 = inlined_call_operand.vmem [shape: bf16[8,32], index: 0, kind: input, shape index: {}]   ;;  %s558_s1 = inlined_call_operand.hbm [shape: bf16[32,256], index: 1, kind: input, shape index: {}]   ;;  %s559_s2 = inlined_call_operand.vmem [shape: f32[1,256], index: 2, kind: input, shape index: {}]   ;;  %s560_s3 = inlined_call_operand.hbm [shape: bf16[256,128], index: 3, kind: input, shape index: {}]   ;;  %s561_s4 = inlined_call_operand.vmem [shape: f32[1,128], index: 4, kind: input, shape index: {}]   ;;  %s562_s5 = inlined_call_operand.hbm [shape: f32[8,128], index: 5, kind: output, shape index: {}]  }
   0x1   :  { %11 = vsyncpa [#allocation6], 0 }
   0x2   :  { %12 = vsyncpa [#allocation4], 0  ;;  %s474_s18 = smov [#allocation2]   ;;  %s402_s22 = scalar_lea.hbm %s558_s1, 512 }
   0x3   :  { %s20_s19 = sshll.u32 %s474_s18, 4  ;;  %p403_p0 = scmp.ne.s32.totalorder %s558_s1, %s402_s22  ;;  %s21_s19 = int_to_ptr.vmem [resolvable:$true] %s20_s19 }
   0x4   :  { %p406_p1 = scmp.lt.u32.totalorder %s402_s22, %s558_s1 }
   0x6   :  { %p408_p2 = pnand %p406_p1, %p403_p0 }
   0x8   :  { %411 = shalt.err (!%p408_p2)
}
   0x9   :  { %s412_s27 = scalar_lea.vmem %s21_s19, 512  ;;  %p417_p4 = scmp.lt.s32.totalorder %s21_s19, %s21_s19 }
   0xa   :  { %p413_p3 = scmp.ne.s32.totalorder %s21_s19, %s412_s27  ;;  %p418_p5 = scmp.lt.s32.totalorder %s412_s27, %s412_s27 }
   0xc   :  { %p419_p6 = por %p418_p5, %p417_p4 }
   0xe   :  { %p420_p7 = pnand %p419_p6, %p413_p3 }
  0x10   :  { %423 = shalt.err (!%p420_p7)
}
  0x11   :  { %s475_s28 = smov 128   ;;  %s476_s29 = smov 8  }
  0x12   :  { %26 = dma.hbm_to_vmem [thread:$0]  %s558_s1, 512, %s21_s19, [#allocation3], %s475_s28, %s475_s28, %s476_s29  }
  0x13   :  { %s477_s7 = smov [#allocation5]   ;;  %s424_s11 = scalar_lea.hbm %s560_s3, 2048 }
  0x14   :  { %s34_s8 = sshll.u32 %s477_s7, 4  ;;  %p425_p8 = scmp.ne.s32.totalorder %s560_s3, %s424_s11  ;;  %s35_s8 = int_to_ptr.vmem [resolvable:$true] %s34_s8 }
  0x15   :  { %p428_p9 = scmp.lt.u32.totalorder %s424_s11, %s560_s3 }
  0x17   :  { %p430_p10 = pnand %p428_p9, %p425_p8 }
  0x19   :  { %433 = shalt.err (!%p430_p10)
}
  0x1a   :  { %s434_s16 = scalar_lea.vmem %s35_s8, 2048  ;;  %p439_p12 = scmp.lt.s32.totalorder %s35_s8, %s35_s8 }
  0x1b   :  { %p435_p11 = scmp.ne.s32.totalorder %s35_s8, %s434_s16  ;;  %p440_p13 = scmp.lt.s32.totalorder %s434_s16, %s434_s16 }
  0x1d   :  { %p441_p0 = por %p440_p13, %p439_p12 }
  0x1f   :  { %p442_p1 = pnand %p441_p0, %p435_p11 }
  0x21   :  { %445 = shalt.err (!%p442_p1)
}
  0x22   :  { %s478_s1 = smov 64   ;;  %s479_s17 = smov 4  }
  0x23   :  { %40 = dma.hbm_to_vmem [thread:$0]  %s560_s3, 2048, %s35_s8, [#allocation6], %s478_s1, %s478_s1, %s479_s17  }
  0x24   :  { %468 = dma.done.wait [#allocation3], 512  }
  0x25   :  { %469 = vsyncadd [#allocation3], 4294966784 }
  0x26   :  { %470 = dma.done.wait [#allocation6], 2048  }
  0x27   :  { %471 = vsyncadd [#allocation6], 4294965248  ;;  %v480_v0 = vmov 0   ;;  %v380_v1 = vld [vmem:[#allocation2 + $0x4] ss:$8 sps:$4 sm:$0xff]   ;;  %vm87_vm0 = vcmask 261120   ;;  %v57_v22 = vlaneseq }
  0x28   :  { %123 = vmatprep.mubr.bf16.mxu0 %v480_v0  ;;  %v382_v2 = vld [vmem:[#allocation2] ss:$8 sps:$4 sm:$0xff]   ;;  %91 = vmatprep.subr.bf16.mxu0 %v380_v1  ;;  %v383_v3 = vld [vmem:[#allocation2 + $0x14] ss:$8 sps:$4 sm:$0xff]   ;;  %v385_v4 = vld [vmem:[#allocation2 + $0x10] ss:$8 sps:$4 sm:$0xff]  }
  0x29   :  { %92 = vmatpush1.bf16.msra.mxu0 %v382_v2  ;;  %v386_v5 = vld [vmem:[#allocation5 + $0x40] sm:$0xff]   ;;  %v388_v8 = vld [vmem:[#allocation5 + $0x48] sm:$0xff]   ;;  %v390_v10 = vld [vmem:[#allocation5 + $0x50] sm:$0xff]   ;;  %v58_v23 = vshrl.u32 %v57_v22, 7 }
  0x2a   :  { %93 = vmatprep.subr.bf16.mxu0 %v383_v3  ;;  %v387_v6 = vld [vmem:[#allocation5] sm:$0xff]   ;;  %350 = vmatprep.subr.bf16.mxu1 %v386_v5  ;;  %v389_v9 = vld [vmem:[#allocation5 + $0x8] sm:$0xff]   ;;  %v391_v11 = vld [vmem:[#allocation5 + $0x10] sm:$0xff]  }
  0x2b   :  { %v50_v7 = vld [vmem:[%s557_s0] sm:$0xf]  ;;  %351 = vmatpush3.bf16.msra.mxu1 %v387_v6  ;;  %v392_v12 = vld [vmem:[#allocation5 + $0x58] sm:$0xff]   ;;  %v396_v16 = vld [vmem:[#allocation5 + $0x68] sm:$0xff]   ;;  %v59_v24 = vsub.s32 0, %v58_v23  ;;  %v63_v26 = vsub.s32 1, %v58_v23 }
  0x2c   :  { %352 = vmatprep.subr.bf16.mxu1 %v388_v8  ;;  %v393_v13 = vld [vmem:[#allocation5 + $0x18] sm:$0xff]   ;;  %v394_v14 = vld [vmem:[#allocation5 + $0x60] sm:$0xff]   ;;  %v397_v17 = vld [vmem:[#allocation5 + $0x28] sm:$0xff]  }
  0x2d   :  { %94 = vmatpush1.bf16.msra.mxu0 %v385_v4  ;;  %v395_v15 = vld [vmem:[#allocation5 + $0x20] sm:$0xff]   ;;  %v398_v18 = vld [vmem:[#allocation5 + $0x70] sm:$0xff]   ;;  %v400_v20 = vld [vmem:[#allocation5 + $0x78] sm:$0xff]  }
  0x2e   :  { %v399_v19 = vld [vmem:[#allocation5 + $0x30] sm:$0xff]   ;;  %v401_v21 = vld [vmem:[#allocation5 + $0x38] sm:$0xff]   ;;  %v55_v25 = vld [vmem:[%s559_s2] sm:$0x3]  ;;  %s481_s2 = smov [#allocation7]  }
  0x2f   :  { %353 = vmatpush3.bf16.msra.mxu1 %v389_v9  ;;  %v60_v27 = vrot.slane %v55_v25, %v59_v24  ;;  %v64_v28 = vrot.slane %v55_v25, %v63_v26  ;;  %v333_v40 = vld [vmem:[%s561_s4] ss:$0 sm:$0xff]  ;;  %s318_s24 = sshll.u32 %s481_s2, 4  ;;  %s319_s24 = int_to_ptr.vmem [resolvable:$true] %s318_s24 }
  0x30   :  { %332 = vmatmul.mubr.msk.bf16.vlgmr.msra.gmra.mrb[0].mxu0 %vm87_vm0, %v50_v7  ;;  %354 = vmatprep.subr.bf16.mxu1 %v390_v10  ;;  %s446_s25 = scalar_lea.vmem %s319_s24, 128  ;;  %p451_p3 = scmp.lt.s32.totalorder %s319_s24, %s319_s24 }
  0x31   :  { %p447_p2 = scmp.ne.s32.totalorder %s319_s24, %s446_s25  ;;  %p452_p4 = scmp.lt.s32.totalorder %s446_s25, %s446_s25 }
  0x33   :  { %355 = vmatpush3.bf16.msra.mxu1 %v391_v11  ;;  %p453_p5 = por %p452_p4, %p451_p3 }
  0x34   :  { %356 = vmatprep.subr.bf16.mxu1 %v392_v12 }
  0x35   :  { %p454_p6 = pnand %p453_p5, %p447_p2 }
  0x37   :  { %357 = vmatpush3.bf16.msra.mxu1 %v393_v13 }
  0x38   :  { %358 = vmatprep.subr.bf16.mxu1 %v394_v14 }
  0x3b   :  { %359 = vmatpush3.bf16.msra.mxu1 %v395_v15 }
  0x3c   :  { %360 = vmatprep.subr.bf16.mxu1 %v396_v16 }
  0x3f   :  { %361 = vmatpush3.bf16.msra.mxu1 %v397_v17 }
  0x40   :  { %362 = vmatprep.subr.bf16.mxu1 %v398_v18 }
  0x43   :  { %363 = vmatpush3.bf16.msra.mxu1 %v399_v19 }
  0x44   :  { %364 = vmatprep.subr.bf16.mxu1 %v400_v20 }
  0x47   :  { %365 = vmatpush3.bf16.msra.mxu1 %v401_v21 }
 0x103   :  { %v125_v29 = vpop.f32.mrb[0].mxu0 }
 0x104   :  { %v126_v30 = vadd.f32 %v125_v29, %v60_v27  ;;  %v127_v31 = vpop.f32.mrb[1].mxu0 }
 0x105   :  { %v128_v32 = vadd.f32 %v127_v31, %v64_v28  ;;  %v129_v33 = vpop.f32.mrb[2].mxu0 }
 0x106   :  { %v132_v34 = vmax.f32 %v126_v30, 0.0  ;;  %v130_v35 = vpop.f32.mrb[3].mxu0 }
 0x107   :  { %v133_v36 = vmax.f32 %v128_v32, 0.0 }
 0x108   :  { %v134_v38 = vpack.c.bf16 %v132_v34, %v132_v34 }
 0x109   :  { %v135_v37 = vpack.c.bf16 %v133_v36, %v133_v36 }
 0x10b   :  { %303 = vmatprep.mubr.bf16.mxu1 %v135_v37 }
 0x10c   :  { %304 = vmatmul.mubr.bf16.vlgmr.msra.gmra.mrb[0].mxu1 %v134_v38 }
 0x1df   :  { %v366_v39 = vpop.f32.mrb[0].mxu1 }
 0x1e0   :  { %v367_v41 = vpop.f32.mrb[1].mxu1 }
 0x1e1   :  { %v368_v42 = vadd.f32 %v367_v41, %v366_v39  ;;  %v369_v43 = vpop.f32.mrb[2].mxu1 }
 0x1e2   :  { %v370_v44 = vpop.f32.mrb[3].mxu1 }
 0x1e3   :  { %v306_v45 = vadd.f32 %v368_v42, %v333_v40 }
 0x1e5   :  { %311 = vst [vmem:[#allocation7] sm:$0xff] %v306_v45 }
 0x1e6   :  { %457 = shalt.err (!%p454_p6)
}
 0x1e7   :  { %s458_s4 = scalar_lea.hbm %s562_s5, 128 }
 0x1e8   :  { %p459_p7 = scmp.ne.s32.totalorder %s562_s5, %s458_s4  ;;  %p462_p8 = scmp.lt.u32.totalorder %s458_s4, %s562_s5 }
 0x1ea   :  { %p464_p9 = pnand %p462_p8, %p459_p7 }
 0x1ec   :  { %467 = shalt.err (!%p464_p9)
}
 0x1ed   :  { %321 = dma.vmem_to_hbm [thread:$0]  %s319_s24, 128, %s562_s5, [#allocation4]  }
 0x1ee   :  { %472 = dma.done.wait [#allocation4], 128  }
 0x1ef   :  { %473 = vsyncadd [#allocation4], 4294967168 }
 0x1f0   :  { %325 = vsyncpa [#allocation3], 1 }
 0x1f1   :  { %326 = vsyncpa [#allocation6], 1 }
 0x1f2   :  { %327 = vsyncpa [#allocation4], 1 }

</bundles_post_ra>
